<compile_context>
chip_gen: v5e
topology: v5e:2x2
jax: 0.10.0
libtpu: 0.0.40
codegen_flags: <defaults>
</compile_context>

<pallas_src>
import functools

import jax
import jax.numpy as jnp
from jax.experimental import pallas as pl
from jax.experimental.pallas import tpu as pltpu


def _focal_nll_kernel(x_ref, t_ref, out_ref, *, tiles_per_split, n_total, needs_mask):
    j = pl.program_id(1)

    @pl.when(j == 0)
    def _init():
        out_ref[...] = jnp.zeros_like(out_ref)

    x = x_ref[...]                                  # [T, C] logits tile, native dtype
    t = t_ref[...]                                  # [T, 1] int32 targets tile
    tile_rows, c = x.shape

    if needs_mask:
        # Only compiled in when the batch doesn't tile exactly (partial / overshoot tiles).
        s = pl.program_id(0)
        row0 = (s * tiles_per_split + j) * tile_rows
        rows = jax.lax.broadcasted_iota(jnp.int32, (tile_rows, 1), 0) + row0
        valid = rows < n_total                      # [T, 1]
        x = jnp.where(valid, x, 0)                  # zero garbage rows before any math

    # Row max + target-logit gather in the native dtype (exact); upcast only [T,1] results.
    cols = jax.lax.broadcasted_iota(jnp.int32, (1, c), 1)           # (1, C), broadcasts vs [T,1]
    m = jnp.max(x, axis=-1, keepdims=True).astype(jnp.float32)                       # [T, 1]
    x_t = jnp.sum(jnp.where(cols == t, x, 0), axis=-1, keepdims=True).astype(jnp.float32)

    # f32 stable logsumexp; cast/sub/exp/sum chain is left fused (no explicit f32 tile copy).
    lse = m + jnp.log(jnp.sum(jnp.exp(x.astype(jnp.float32) - m), axis=-1, keepdims=True))
    nll = lse - x_t                                                                   # [T, 1]
    if needs_mask:
        nll = jnp.where(valid, nll, 0.0)

    out_ref[...] += jnp.sum(nll)                    # broadcast-add into this split's accumulator


def weighted_focal_loss(x, target, *, gamma=0.0, alpha=None, size_average=True, tile_n=None):
    """Pallas equivalent of WeightedFocalLoss(gamma, alpha, size_average)(x, target)."""
    del alpha          # stored but unused in the PyTorch forward()
    del size_average   # loss is a scalar; mean() == sum()

    n, c = x.shape
    t2 = target.astype(jnp.int32).reshape(n, 1)

    # ~2M elements per grid step (~8 MiB f32 compute tile).  With default double-buffered
    # native-dtype inputs plus the fused f32 temporaries this stays well under v7x's 64 MiB
    # per-TC VMEM and leaves large headroom on v5e/v6e (128 MiB).
    if tile_n is None:
        tile_n = max(8, (2 * 1024 * 1024) // max(c, 1))
    tile_n = min(int(tile_n), n)
    if tile_n < n:
        tile_n = max(8, (tile_n // 8) * 8)          # sublane alignment when actually tiling

    tiles_total = pl.cdiv(n, tile_n)
    num_splits = 2 if tiles_total >= 2 else 1       # shard stream across both TCs on v7x
    tiles_per_split = pl.cdiv(tiles_total, num_splits)
    covered_blocks = num_splits * tiles_per_split
    needs_mask = covered_blocks * tile_n != n       # partial or overshoot tiles exist

    def row_block(s, j):
        idx = s * tiles_per_split + j
        if covered_blocks != tiles_total:           # overshoot blocks: clamp, kernel masks them
            idx = jnp.minimum(idx, tiles_total - 1)
        return idx

    kernel = functools.partial(
        _focal_nll_kernel,
        tiles_per_split=tiles_per_split,
        n_total=n,
        needs_mask=needs_mask,
    )

    cost = pl.CostEstimate(
        flops=6 * n * c,                            # max, cmp, select, sub, sum x2 (approx)
        transcendentals=n * c + 2 * n,              # exp over [N, C] + per-row log
        bytes_accessed=n * c * x.dtype.itemsize + n * 4 + num_splits * 8 * 128 * 4,
    )

    partial_sums = pl.pallas_call(
        kernel,
        out_shape=jax.ShapeDtypeStruct((num_splits, 8, 128), jnp.float32),
        grid_spec=pltpu.PrefetchScalarGridSpec(
            num_scalar_prefetch=0,
            grid=(num_splits, tiles_per_split),
            in_specs=[
                pl.BlockSpec((tile_n, c), lambda s, j: (row_block(s, j), 0)),  # logits stream
                pl.BlockSpec((tile_n, 1), lambda s, j: (row_block(s, j), 0)),  # targets stream
            ],
            out_specs=pl.BlockSpec((1, 8, 128), lambda s, j: (s, 0, 0)),       # per-split acc
        ),
        compiler_params=pltpu.CompilerParams(
            dimension_semantics=("parallel", "arbitrary"),
            vmem_limit_bytes=64 * 1024 * 1024,
        ),
        cost_estimate=cost,
    )(x, t2)

    # Tiny epilogue in JAX: reduce the per-core partial sums, then apply the focal transform.
    total_nll = jnp.sum(partial_sums[:, 0, 0])
    ce = total_nll / jnp.float32(n)                 # cross_entropy reduction='mean' over N
    logpt = -ce
    pt = jnp.exp(logpt)
    return -1.0 * (1.0 - pt) ** jnp.float32(gamma) * logpt


def _reference(x, target, gamma):
    """Pure-JAX reference mirroring the PyTorch forward exactly (double log_softmax)."""
    z = jax.nn.log_softmax(x.astype(jnp.float32), axis=-1)
    z2 = jax.nn.log_softmax(z, axis=-1)
    nll = -jnp.take_along_axis(z2, target[:, None].astype(jnp.int32), axis=-1)[:, 0]
    ce = jnp.mean(nll)
    logpt = -ce
    pt = jnp.exp(logpt)
    return -1.0 * (1.0 - pt) ** jnp.float32(gamma) * logpt


if __name__ == "__main__":
    k0, k1, k2, k3, k4, k5 = jax.random.split(jax.random.PRNGKey(0), 6)

    # Small canonical case: batch=8, classes=32 (single tile, no masking, no split).
    N, C = 8, 32
    x = jax.random.normal(k0, (N, C), dtype=jnp.float32)
    target = jax.random.randint(k1, (N,), 0, C, dtype=jnp.int32)
    for gamma in (0.0, 2.0):
        loss = jax.block_until_ready(
            weighted_focal_loss(x, target, gamma=gamma, alpha=0.25, size_average=True))
        ref = _reference(x, target, gamma)
        assert jnp.allclose(loss, ref, rtol=1e-5, atol=1e-5), (gamma, loss, ref)

    # Streaming path: 2-way core split, partial (masked) final tile, C not multiple of 128.
    N2, C2 = 200, 96
    x2 = jax.random.normal(k2, (N2, C2), dtype=jnp.float32)
    t2 = jax.random.randint(k3, (N2,), 0, C2, dtype=jnp.int32)
    loss2 = jax.block_until_ready(weighted_focal_loss(x2, t2, gamma=2.0, alpha=0.25, tile_n=64))
    ref2 = _reference(x2, t2, 2.0)
    assert jnp.allclose(loss2, ref2, rtol=1e-5, atol=1e-5), (loss2, ref2)

    # Odd tile count: exercises the clamped overshoot block (fully masked duplicate tile).
    loss3 = jax.block_until_ready(weighted_focal_loss(x2, t2, gamma=2.0, alpha=0.25, tile_n=72))
    assert jnp.allclose(loss3, ref2, rtol=1e-5, atol=1e-5), (loss3, ref2)

    # bf16 inputs: native-dtype max/gather path, 2-way split, exact tiling (no masking).
    N4, C4 = 160, 96
    x4 = jax.random.normal(k4, (N4, C4), dtype=jnp.float32).astype(jnp.bfloat16)
    t4 = jax.random.randint(k5, (N4,), 0, C4, dtype=jnp.int32)
    loss4 = jax.block_until_ready(weighted_focal_loss(x4, t4, gamma=2.0, alpha=0.25, tile_n=40))
    ref4 = _reference(x4, t4, 2.0)
    assert jnp.allclose(loss4, ref4, rtol=1e-5, atol=1e-5), (loss4, ref4)

    print("KERNEL_OK")
</pallas_src>

<mosaic_0001>
module attributes {stable_mosaic.version = 11 : i64} {
  func.func @_focal_nll_kernel(%arg0: i32, %arg1: i32, %arg2: memref<8x32xf32, #tpu.memory_space<vmem>>, %arg3: memref<8x1xi32, #tpu.memory_space<vmem>>, %arg4: memref<1x8x128xf32, #tpu.memory_space<vmem>>) attributes {dimension_semantics = [#tpu.dimension_semantics<parallel>, #tpu.dimension_semantics<arbitrary>], iteration_bounds = array<i64: 1, 1>, scalar_prefetch = 0 : i64, scratch_operands = 0 : i64, tpu.core_type = #tpu.core_type<tc>, window_params = [{transform_indices = @transform_0, window_bounds = array<i64: 8, 32>}, {transform_indices = @transform_1, window_bounds = array<i64: 8, 1>}, {transform_indices = @transform_2, window_bounds = array<i64: 1, 8, 128>}]} {
    %c0_i32 = arith.constant 0 : i32
    %0 = arith.cmpi eq, %arg1, %c0_i32 : i32
    %1 = arith.extui %0 : i1 to i32
    %c0_i32_0 = arith.constant 0 : i32
    %2 = arith.cmpi ne, %1, %c0_i32_0 : i32
    scf.if %2 {
      %cst_14 = arith.constant 0.000000e+00 : f32
      %32 = vector.broadcast %cst_14 : f32 to vector<1x8x128xf32>
      %c0_15 = arith.constant 0 : index
      %c0_16 = arith.constant 0 : index
      %c0_17 = arith.constant 0 : index
      %33 = vector.load %arg4[%c0_15, %c0_16, %c0_17] : memref<1x8x128xf32, #tpu.memory_space<vmem>>, vector<1x8x128xf32>
      tpu.vector_store %arg4[%c0_15, %c0_16, %c0_17], %32 {strides = array<i32>} : memref<1x8x128xf32, #tpu.memory_space<vmem>>, vector<1x8x128xf32>,
    } else {
    }
    %c0 = arith.constant 0 : index
    %c0_1 = arith.constant 0 : index
    %3 = vector.load %arg2[%c0, %c0_1] : memref<8x32xf32, #tpu.memory_space<vmem>>, vector<8x32xf32>
    %c0_2 = arith.constant 0 : index
    %c0_3 = arith.constant 0 : index
    %4 = vector.load %arg3[%c0_2, %c0_3] : memref<8x1xi32, #tpu.memory_space<vmem>>, vector<8x1xi32>
    %5 = tpu.iota {dimensions = array<i32: 1>} : vector<1x32xi32>
    %cst = arith.constant dense<0xFF800000> : vector<8xf32>
    %6 = vector.multi_reduction <maximumf>, %3, %cst [1] : vector<8x32xf32> to vector<8xf32>
    %7 = vector.shape_cast %6 : vector<8xf32> to vector<8x1xf32>
    %8 = vector.broadcast %5 : vector<1x32xi32> to vector<8x32xi32>
    %9 = vector.broadcast %4 : vector<8x1xi32> to vector<8x32xi32>
    %10 = arith.cmpi eq, %8, %9 : vector<8x32xi32>
    %c0_i32_4 = arith.constant 0 : i32
    %11 = arith.sitofp %c0_i32_4 : i32 to f32
    %12 = vector.broadcast %11 : f32 to vector<8x32xf32>
    %13 = arith.select %10, %3, %12 : vector<8x32xi1>, vector<8x32xf32>
    %cst_5 = arith.constant dense<0.000000e+00> : vector<8xf32>
    %14 = vector.multi_reduction <add>, %13, %cst_5 [1] : vector<8x32xf32> to vector<8xf32>
    %15 = vector.shape_cast %14 : vector<8xf32> to vector<8x1xf32>
    %16 = vector.broadcast %7 : vector<8x1xf32> to vector<8x32xf32>
    %17 = arith.subf %3, %16 : vector<8x32xf32>
    %18 = math.exp %17 : vector<8x32xf32>
    %cst_6 = arith.constant dense<0.000000e+00> : vector<8xf32>
    %19 = vector.multi_reduction <add>, %18, %cst_6 [1] : vector<8x32xf32> to vector<8xf32>
    %20 = vector.shape_cast %19 : vector<8xf32> to vector<8x1xf32>
    %21 = math.log %20 : vector<8x1xf32>
    %22 = arith.addf %7, %21 : vector<8x1xf32>
    %23 = arith.subf %22, %15 : vector<8x1xf32>
    %c0_7 = arith.constant 0 : index
    %c0_8 = arith.constant 0 : index
    %c0_9 = arith.constant 0 : index
    %24 = vector.load %arg4[%c0_7, %c0_8, %c0_9] : memref<1x8x128xf32, #tpu.memory_space<vmem>>, vector<1x8x128xf32>
    %25 = vector.shape_cast %23 : vector<8x1xf32> to vector<1x8x1xf32>
    %cst_10 = arith.constant dense<0.000000e+00> : vector<1xf32>
    %26 = vector.multi_reduction <add>, %25, %cst_10 [1, 2] : vector<1x8x1xf32> to vector<1xf32>
    %27 = vector.shape_cast %26 : vector<1xf32> to vector<1x1x1xf32>
    %28 = vector.extract %27[0, 0, 0] : f32 from vector<1x1x1xf32>
    %29 = vector.broadcast %28 : f32 to vector<1x8x128xf32>
    %30 = arith.addf %24, %29 : vector<1x8x128xf32>
    %c0_11 = arith.constant 0 : index
    %c0_12 = arith.constant 0 : index
    %c0_13 = arith.constant 0 : index
    %31 = vector.load %arg4[%c0_11, %c0_12, %c0_13] : memref<1x8x128xf32, #tpu.memory_space<vmem>>, vector<1x8x128xf32>
    tpu.vector_store %arg4[%c0_11, %c0_12, %c0_13], %30 {strides = array<i32>} : memref<1x8x128xf32, #tpu.memory_space<vmem>>, vector<1x8x128xf32>,
    return
  }
  func.func @transform_0(%arg0: i32, %arg1: i32) -> (i32, i32) {
    %c1_i32 = arith.constant 1 : i32
    %0 = arith.muli %arg0, %c1_i32 : i32
    %1 = arith.addi %0, %arg1 : i32
    %c0_i32 = arith.constant 0 : i32
    %c0_i32_0 = arith.constant 0 : i32
    return %1, %c0_i32 : i32, i32
  }
  func.func @transform_1(%arg0: i32, %arg1: i32) -> (i32, i32) {
    %c1_i32 = arith.constant 1 : i32
    %0 = arith.muli %arg0, %c1_i32 : i32
    %1 = arith.addi %0, %arg1 : i32
    %c0_i32 = arith.constant 0 : i32
    %c0_i32_0 = arith.constant 0 : i32
    return %1, %c0_i32 : i32, i32
  }
  func.func @transform_2(%arg0: i32, %arg1: i32) -> (i32, i32, i32) {
    %c0_i32 = arith.constant 0 : i32
    %c0_i32_0 = arith.constant 0 : i32
    %c0_i32_1 = arith.constant 0 : i32
    return %arg0, %c0_i32, %c0_i32_0 : i32, i32, i32
  }
}

</mosaic_0001>

<bundles_post_ra>
// kernel: tpu_custom_call.1
= control target key start
LH: loop header
LB: loop body
LE: loop exit
PB: predicated region body
PF: predicated region fallthrough
CT: control target
= control target key end

     0   :  { %vm55_vm0 = vcmask 261120   ;;  %s185_s0 = inlined_call_operand.vmem [shape: f32[8,32], index: 0, kind: input, shape index: {}]   ;;  %s186_s1 = inlined_call_operand.vmem [shape: s32[8,1], index: 1, kind: input, shape index: {}]   ;;  %s187_s2 = inlined_call_operand.hbm [shape: f32[1,8,128], index: 2, kind: output, shape index: {}]  }
   0x1   :  { %v51_v0 = vld [vmem:[%s185_s0] sm:$0xff] }
   0x2   :  { %7 = vsyncpa [#allocation3], 0  ;;  %v56_v1 = vsel %vm55_vm0, %v51_v0, -inf  ;;  %v156_v2 = vmov 0   ;;  %v52_v3 = vld [vmem:[%s186_s1] sm:$0xff]  ;;  %v53_v9 = vlaneseq  ;;  %vm78_vm2 = vcmask 7168  }
   0x3   :  { %125 = vset.pattern.permute.xlu0 %v156_v2  ;;  %s157_s0 = smov [#allocation2]   ;;  %s99_s15 = sshll.u32 %s187_s2, 4  ;;  %s100_s15 = int_to_ptr.hbm [resolvable:$true] %s99_s15 }
   0x4   :  { %57 = vmax.xlane.f32.xlu0 %v56_v1  ;;  %v54_v10 = vand.u32 127, %v53_v9  ;;  %s97_s1 = sshll.u32 %s157_s0, 4  ;;  %s98_s1 = int_to_ptr.vmem [resolvable:$true] %s97_s1 }
  0x18   :  { %60 = vperm.xlu0 %125, %v52_v3  }
  0x77   :  { %v58_v4 = vpop.xlane.xlu0 %57 }
  0x78   :  { %v67_v5 = vsub.f32 %v51_v0, %v58_v4 }
  0x7a   :  { %v68_v6 = vmul.f32 1.442695, %v67_v5 }
  0x7c   :  { %126 = vpow2.f32 %v68_v6 }
  0x82   :  { %v127_v7 = vpop.eup %126 }
  0x83   :  { %v70_v8 = vsel %vm55_vm0, %v127_v7, 0.0 }
  0x84   :  { %71 = vadd.xlane.f32.xlu1 %v70_v8 }
  0x8a   :  { %v61_v11 = vpop.permute.xlu0 %60 }
  0x8b   :  { %vm62_vm1 = vcmp.eq.s32.totalorder %v54_v10, %v61_v11 }
  0x8c   :  { %v63_v12 = vsel %vm62_vm1, %v51_v0, 0.0 }
  0x8d   :  { %v64_v13 = vsel %vm55_vm0, %v63_v12, 0.0 }
  0x8e   :  { %65 = vadd.xlane.f32.xlu1 %v64_v13 }
  0xf7   :  { %v72_v14 = vpop.xlane.xlu1 %71 }
  0xf8   :  { %128 = vlog2.f32 %v72_v14 }
  0xfe   :  { %v129_v15 = vpop.eup %128 }
  0xff   :  { %v74_v16 = vmul.f32 0.6931472, %v129_v15 }
 0x101   :  { %v75_v17 = vadd.f32 %v74_v16, %v58_v4  ;;  %v66_v18 = vpop.xlane.xlu1 %65 }
 0x103   :  { %v76_v19 = vsub.f32 %v75_v17, %v66_v18 }
 0x105   :  { %v79_v20 = vsel %vm78_vm2, %v76_v19, 0.0 }
 0x106   :  { %80 = vadd.xlane.f32.xlu2 %v79_v20 }
 0x179   :  { %v81_v21 = vpop.xlane.xlu2 %80 }
 0x17a   :  { %v82_v22 = vrot.slane %v81_v21, 4 }
 0x17c   :  { %v83_v23 = vadd.f32 %v82_v22, %v81_v21 }
 0x17e   :  { %v84_v24 = vrot.slane %v83_v23, 2 }
 0x180   :  { %v85_v25 = vadd.f32 %v84_v24, %v83_v23 }
 0x182   :  { %v86_v26 = vrot.slane %v85_v25, 1 }
 0x184   :  { %v87_v27 = vadd.f32 %v86_v26, %v85_v25 }
 0x186   :  { %120 = vpush %v87_v27 }
 0x1b7   :  { %s121_s16 = spop %120 }
 0x1b8   :  { %v89_v28 = vstv %s121_s16 }
 0x1b9   :  { %91 = vst [vmem:[#allocation2] sm:$0xff] %v89_v28 }
 0x1ba   :  { %102 = dma.vmem_to_hbm [thread:$0]  %s98_s1, 128, %s100_s15, [#allocation3]  }
 0x1bb   :  { %154 = dma.done.wait [#allocation3], 128  }
 0x1bc   :  { %155 = vsyncadd [#allocation3], 4294967168 }
 0x1bd   :  { %107 = vsyncpa [#allocation3], 1 }

</bundles_post_ra>
